<compile_context>
chip_gen: v5e
topology: v5e:2x2
jax: 0.10.0
libtpu: 0.0.40
codegen_flags: <defaults>
</compile_context>

<pallas_src>
import jax
import jax.numpy as jnp
from jax import lax
from jax.experimental import pallas as pl
from jax.experimental.pallas import tpu as pltpu


def _head_kernel(xq_ref, xkv_ref, wk_ref, wq_ref, wv_ref, o_ref):
    # xq_ref : (tq, C) bf16  -- query rows for this block
    # xkv_ref: (T,  C) bf16  -- full sequence (for K and V)
    # wk/wq/wv: (C, Hp) bf16 -- head dim padded to a multiple of 128
    # o_ref  : (tq, Hp) f32
    qi = pl.program_id(1)
    tq, C = xq_ref.shape
    T = xkv_ref.shape[0]

    # Projections on the MXU: bf16 inputs, f32 accumulate.
    q = jnp.dot(xq_ref[...], wq_ref[...], preferred_element_type=jnp.float32)   # (tq, Hp)
    k = jnp.dot(xkv_ref[...], wk_ref[...], preferred_element_type=jnp.float32)  # (T, Hp)
    v = jnp.dot(xkv_ref[...], wv_ref[...], preferred_element_type=jnp.float32)  # (T, Hp)

    # Fold the C**-0.5 scale (C = embedding dim, exactly as in the PyTorch
    # forward) into q: O(tq*Hp) VPU work instead of scaling the (tq, T) scores.
    scale = jnp.float32(C) ** -0.5
    q_b = (q * scale).astype(jnp.bfloat16)
    k_b = k.astype(jnp.bfloat16)

    # Scores: contract the last dim of both operands directly on the MXU
    # (no XLU transpose / VMEM shuffle for k.T).
    s = lax.dot_general(q_b, k_b, (((1,), (1,)), ((), ())),
                        preferred_element_type=jnp.float32)                      # (tq, T)

    # Causal mask with a finite sentinel (global row index = qi*tq + local row).
    row = qi * tq + lax.broadcasted_iota(jnp.int32, (tq, T), 0)
    col = lax.broadcasted_iota(jnp.int32, (tq, T), 1)
    s = jnp.where(col <= row, s, jnp.float32(-1e30))

    # Numerically stable softmax in f32; reciprocal on the (otherwise idle) EUP.
    s = s - jnp.max(s, axis=-1, keepdims=True)
    p = jnp.exp(s)
    p = p * pl.reciprocal(jnp.sum(p, axis=-1, keepdims=True), approx=True)

    # Dropout (eval mode) is identity.

    # Output: p @ v, bf16 operands, f32 accumulate; lane-dense (Hp multiple of 128) store.
    o_ref[...] = jnp.dot(p.astype(jnp.bfloat16), v.astype(jnp.bfloat16),
                         preferred_element_type=jnp.float32).astype(o_ref.dtype)


@jax.jit
def head_forward(x, w_key, w_query, w_value):
    """x: (B, T, C) float32; weights: (C, H) float32. Returns (B, T, H) float32."""
    B, T, C = x.shape
    H = w_key.shape[1]
    # Pad the head dim to the 128-lane width: unmasked stores + full MXU columns.
    Hp = ((H + 127) // 128) * 128

    def prep_w(w):
        if Hp != H:
            w = jnp.pad(w, ((0, 0), (0, Hp - H)))   # zero cols -> zero output cols, sliced off
        return w.astype(jnp.bfloat16)

    wk, wq, wv = prep_w(w_key), prep_w(w_query), prep_w(w_value)
    x_bf = x.astype(jnp.bfloat16)

    # Query-block tiling: second *parallel* grid axis (helps v7x's 2 TensorCores
    # when B is small).  block_size <= 256 in the spec, so the full-T K/V per
    # step easily fits VMEM and the per-block K/V recompute is at most 2x.
    tq = 128 if (T % 128 == 0) else T
    nq = T // tq

    flops = B * (3 * 2 * T * C * Hp + 2 * 2 * T * T * Hp)
    transcendentals = B * T * T
    bytes_accessed = (2 * B * T * C * 2) + (3 * C * Hp * 2) + (B * T * Hp * 4)

    out_padded = pl.pallas_call(
        _head_kernel,
        out_shape=jax.ShapeDtypeStruct((B, T, Hp), jnp.float32),
        grid_spec=pltpu.PrefetchScalarGridSpec(
            num_scalar_prefetch=0,
            grid=(B, nq),
            in_specs=[
                pl.BlockSpec((None, tq, C), lambda b, qi: (b, qi, 0)),  # x, query tile
                pl.BlockSpec((None, T, C), lambda b, qi: (b, 0, 0)),    # x, full seq (K/V)
                pl.BlockSpec((C, Hp), lambda b, qi: (0, 0)),            # w_key
                pl.BlockSpec((C, Hp), lambda b, qi: (0, 0)),            # w_query
                pl.BlockSpec((C, Hp), lambda b, qi: (0, 0)),            # w_value
            ],
            out_specs=pl.BlockSpec((None, tq, Hp), lambda b, qi: (b, qi, 0)),
        ),
        compiler_params=pltpu.CompilerParams(
            dimension_semantics=("parallel", "parallel"),
        ),
        cost_estimate=pl.CostEstimate(
            flops=flops,
            transcendentals=transcendentals,
            bytes_accessed=bytes_accessed,
        ),
    )(x_bf, x_bf, wk, wq, wv)

    return out_padded[:, :, :H].astype(x.dtype)


def reference_head(x, w_key, w_query, w_value):
    """Pure-JAX f32 reference matching the PyTorch forward (eval mode)."""
    B, T, C = x.shape
    k = x @ w_key
    q = x @ w_query
    v = x @ w_value
    wei = (q @ jnp.swapaxes(k, -2, -1)) * (C ** -0.5)
    mask = jnp.tril(jnp.ones((T, T), dtype=bool))
    wei = jnp.where(mask, wei, -jnp.inf)
    wei = jax.nn.softmax(wei, axis=-1)
    return wei @ v


if __name__ == "__main__":
    # Small, self-consistent shapes (synthetic n_embd / head_size).
    B, T = 2, 8
    n_embd = 32
    head_size = 16

    key = jax.random.PRNGKey(0)
    kx, kk, kq, kv = jax.random.split(key, 4)

    x = jax.random.normal(kx, (B, T, n_embd), dtype=jnp.float32)
    # torch nn.Linear(n_embd, head_size, bias=False) weight is (head_size, n_embd);
    # we store its transpose (n_embd, head_size) so the kernel does x @ W.
    bound = 1.0 / (n_embd ** 0.5)
    w_key = jax.random.uniform(kk, (n_embd, head_size), jnp.float32, -bound, bound)
    w_query = jax.random.uniform(kq, (n_embd, head_size), jnp.float32, -bound, bound)
    w_value = jax.random.uniform(kv, (n_embd, head_size), jnp.float32, -bound, bound)

    out = head_forward(x, w_key, w_query, w_value)
    out = jax.block_until_ready(out)

    ref = reference_head(x, w_key, w_query, w_value)
    assert out.shape == (B, T, head_size), out.shape
    # bf16 matmul inputs (f32 accumulate) -> compare against the f32 reference
    # at bf16-appropriate tolerance.
    err = float(jnp.max(jnp.abs(out - ref)))
    assert jnp.allclose(out, ref, atol=5e-2, rtol=5e-2), err

    print("KERNEL_OK")
</pallas_src>

<mosaic_0001>
module attributes {stable_mosaic.version = 11 : i64} {
  func.func @_head_kernel(%arg0: i32, %arg1: i32, %arg2: memref<1x8x32xbf16, #tpu.memory_space<vmem>>, %arg3: memref<1x8x32xbf16, #tpu.memory_space<vmem>>, %arg4: memref<32x128xbf16, #tpu.memory_space<vmem>>, %arg5: memref<32x128xbf16, #tpu.memory_space<vmem>>, %arg6: memref<32x128xbf16, #tpu.memory_space<vmem>>, %arg7: memref<1x8x128xf32, #tpu.memory_space<vmem>>) attributes {dimension_semantics = [#tpu.dimension_semantics<parallel>, #tpu.dimension_semantics<parallel>], iteration_bounds = array<i64: 2, 1>, scalar_prefetch = 0 : i64, scratch_operands = 0 : i64, tpu.core_type = #tpu.core_type<tc>, window_params = [{transform_indices = @transform_0, window_bounds = array<i64: 1, 8, 32>}, {transform_indices = @transform_1, window_bounds = array<i64: 1, 8, 32>}, {pipeline_mode = #tpu.pipeline_mode<synchronous>, transform_indices = @transform_2, window_bounds = array<i64: 32, 128>}, {pipeline_mode = #tpu.pipeline_mode<synchronous>, transform_indices = @transform_3, window_bounds = array<i64: 32, 128>}, {pipeline_mode = #tpu.pipeline_mode<synchronous>, transform_indices = @transform_4, window_bounds = array<i64: 32, 128>}, {transform_indices = @transform_5, window_bounds = array<i64: 1, 8, 128>}]} {
    %c0 = arith.constant 0 : index
    %c0_0 = arith.constant 0 : index
    %c0_1 = arith.constant 0 : index
    %0 = vector.load %arg2[%c0, %c0_0, %c0_1] : memref<1x8x32xbf16, #tpu.memory_space<vmem>>, vector<1x8x32xbf16>
    %1 = vector.shape_cast %0 : vector<1x8x32xbf16> to vector<8x32xbf16>
    %c0_2 = arith.constant 0 : index
    %c0_3 = arith.constant 0 : index
    %2 = vector.load %arg5[%c0_2, %c0_3] : memref<32x128xbf16, #tpu.memory_space<vmem>>, vector<32x128xbf16>
    %cst = arith.constant dense<0.000000e+00> : vector<8x128xf32>
    %3 = tpu.matmul %1, %2, %cst {dimension_numbers = #tpu.dot_dimension_numbers<[1], [0], [0], [1], [0, 0, 1, 1], [], []>} : vector<8x32xbf16>, vector<32x128xbf16>, vector<8x128xf32> -> vector<8x128xf32>
    %c0_4 = arith.constant 0 : index
    %c0_5 = arith.constant 0 : index
    %c0_6 = arith.constant 0 : index
    %4 = vector.load %arg3[%c0_4, %c0_5, %c0_6] : memref<1x8x32xbf16, #tpu.memory_space<vmem>>, vector<1x8x32xbf16>
    %5 = vector.shape_cast %4 : vector<1x8x32xbf16> to vector<8x32xbf16>
    %c0_7 = arith.constant 0 : index
    %c0_8 = arith.constant 0 : index
    %6 = vector.load %arg4[%c0_7, %c0_8] : memref<32x128xbf16, #tpu.memory_space<vmem>>, vector<32x128xbf16>
    %cst_9 = arith.constant dense<0.000000e+00> : vector<8x128xf32>
    %7 = tpu.matmul %5, %6, %cst_9 {dimension_numbers = #tpu.dot_dimension_numbers<[1], [0], [0], [1], [0, 0, 1, 1], [], []>} : vector<8x32xbf16>, vector<32x128xbf16>, vector<8x128xf32> -> vector<8x128xf32>
    %c0_10 = arith.constant 0 : index
    %c0_11 = arith.constant 0 : index
    %c0_12 = arith.constant 0 : index
    %8 = vector.load %arg3[%c0_10, %c0_11, %c0_12] : memref<1x8x32xbf16, #tpu.memory_space<vmem>>, vector<1x8x32xbf16>
    %9 = vector.shape_cast %8 : vector<1x8x32xbf16> to vector<8x32xbf16>
    %c0_13 = arith.constant 0 : index
    %c0_14 = arith.constant 0 : index
    %10 = vector.load %arg6[%c0_13, %c0_14] : memref<32x128xbf16, #tpu.memory_space<vmem>>, vector<32x128xbf16>
    %cst_15 = arith.constant dense<0.000000e+00> : vector<8x128xf32>
    %11 = tpu.matmul %9, %10, %cst_15 {dimension_numbers = #tpu.dot_dimension_numbers<[1], [0], [0], [1], [0, 0, 1, 1], [], []>} : vector<8x32xbf16>, vector<32x128xbf16>, vector<8x128xf32> -> vector<8x128xf32>
    %cst_16 = arith.constant 3.200000e+01 : f32
    %cst_17 = arith.constant -5.000000e-01 : f32
    %12 = math.powf %cst_16, %cst_17 : f32
    %13 = vector.broadcast %12 : f32 to vector<8x128xf32>
    %14 = arith.mulf %3, %13 : vector<8x128xf32>
    %15 = arith.truncf %14 : vector<8x128xf32> to vector<8x128xbf16>
    %16 = arith.truncf %7 : vector<8x128xf32> to vector<8x128xbf16>
    %cst_18 = arith.constant dense<0.000000e+00> : vector<8x8xf32>
    %17 = tpu.matmul %15, %16, %cst_18 {dimension_numbers = #tpu.dot_dimension_numbers<[1], [1], [0], [0], [0, 0, 1, 0], [], []>} : vector<8x128xbf16>, vector<8x128xbf16>, vector<8x8xf32> -> vector<8x8xf32>
    %c8_i32 = arith.constant 8 : i32
    %18 = arith.muli %arg1, %c8_i32 : i32
    %19 = tpu.iota {dimensions = array<i32: 0>} : vector<8x8xi32>
    %20 = vector.broadcast %18 : i32 to vector<8x8xi32>
    %21 = arith.addi %20, %19 : vector<8x8xi32>
    %22 = tpu.iota {dimensions = array<i32: 1>} : vector<8x8xi32>
    %23 = arith.cmpi sle, %22, %21 : vector<8x8xi32>
    %cst_19 = arith.constant -1.000000e+30 : f32
    %24 = vector.broadcast %cst_19 : f32 to vector<8x8xf32>
    %25 = arith.select %23, %17, %24 : vector<8x8xi1>, vector<8x8xf32>
    %cst_20 = arith.constant dense<0xFF800000> : vector<8xf32>
    %26 = vector.multi_reduction <maximumf>, %25, %cst_20 [1] : vector<8x8xf32> to vector<8xf32>
    %27 = vector.shape_cast %26 : vector<8xf32> to vector<8x1xf32>
    %28 = vector.broadcast %27 : vector<8x1xf32> to vector<8x8xf32>
    %29 = arith.subf %25, %28 : vector<8x8xf32>
    %30 = math.exp %29 : vector<8x8xf32>
    %cst_21 = arith.constant dense<0.000000e+00> : vector<8xf32>
    %31 = vector.multi_reduction <add>, %30, %cst_21 [1] : vector<8x8xf32> to vector<8xf32>
    %32 = vector.shape_cast %31 : vector<8xf32> to vector<8x1xf32>
    %33 = tpu.reciprocal %32 {approx = true} : vector<8x1xf32> -> vector<8x1xf32>
    %34 = vector.broadcast %33 : vector<8x1xf32> to vector<8x8xf32>
    %35 = arith.mulf %30, %34 : vector<8x8xf32>
    %36 = arith.truncf %35 : vector<8x8xf32> to vector<8x8xbf16>
    %37 = arith.truncf %11 : vector<8x128xf32> to vector<8x128xbf16>
    %cst_22 = arith.constant dense<0.000000e+00> : vector<8x128xf32>
    %38 = tpu.matmul %36, %37, %cst_22 {dimension_numbers = #tpu.dot_dimension_numbers<[1], [0], [0], [1], [0, 0, 1, 1], [], []>} : vector<8x8xbf16>, vector<8x128xbf16>, vector<8x128xf32> -> vector<8x128xf32>
    %c0_23 = arith.constant 0 : index
    %c0_24 = arith.constant 0 : index
    %c0_25 = arith.constant 0 : index
    %39 = vector.load %arg7[%c0_23, %c0_24, %c0_25] : memref<1x8x128xf32, #tpu.memory_space<vmem>>, vector<1x8x128xf32>
    %40 = vector.shape_cast %39 : vector<1x8x128xf32> to vector<8x128xf32>
    %41 = vector.shape_cast %38 : vector<8x128xf32> to vector<1x8x128xf32>
    tpu.vector_store %arg7[%c0_23, %c0_24, %c0_25], %41 {strides = array<i32>} : memref<1x8x128xf32, #tpu.memory_space<vmem>>, vector<1x8x128xf32>,
    return
  }
  func.func @transform_0(%arg0: i32, %arg1: i32) -> (i32, i32, i32) {
    %c0_i32 = arith.constant 0 : i32
    %c0_i32_0 = arith.constant 0 : i32
    return %arg0, %arg1, %c0_i32 : i32, i32, i32
  }
  func.func @transform_1(%arg0: i32, %arg1: i32) -> (i32, i32, i32) {
    %c0_i32 = arith.constant 0 : i32
    %c0_i32_0 = arith.constant 0 : i32
    %c0_i32_1 = arith.constant 0 : i32
    return %arg0, %c0_i32, %c0_i32_0 : i32, i32, i32
  }
  func.func @transform_2(%arg0: i32, %arg1: i32) -> (i32, i32) {
    %c0_i32 = arith.constant 0 : i32
    %c0_i32_0 = arith.constant 0 : i32
    %c0_i32_1 = arith.constant 0 : i32
    return %c0_i32, %c0_i32_0 : i32, i32
  }
  func.func @transform_3(%arg0: i32, %arg1: i32) -> (i32, i32) {
    %c0_i32 = arith.constant 0 : i32
    %c0_i32_0 = arith.constant 0 : i32
    %c0_i32_1 = arith.constant 0 : i32
    return %c0_i32, %c0_i32_0 : i32, i32
  }
  func.func @transform_4(%arg0: i32, %arg1: i32) -> (i32, i32) {
    %c0_i32 = arith.constant 0 : i32
    %c0_i32_0 = arith.constant 0 : i32
    %c0_i32_1 = arith.constant 0 : i32
    return %c0_i32, %c0_i32_0 : i32, i32
  }
  func.func @transform_5(%arg0: i32, %arg1: i32) -> (i32, i32, i32) {
    %c0_i32 = arith.constant 0 : i32
    %c0_i32_0 = arith.constant 0 : i32
    return %arg0, %arg1, %c0_i32 : i32, i32, i32
  }
}

</mosaic_0001>

<bundles_post_ra>
// kernel: head_forward.1
= control target key start
LH: loop header
LB: loop body
LE: loop exit
PB: predicated region body
PF: predicated region fallthrough
CT: control target
= control target key end

     0   :  { %10 = vsyncpa [#allocation3], 0  ;;  %s858_s0 = inlined_call_operand.vmem [shape: bf16[2,8,32], index: 0, kind: input, shape index: {}, may-alias: {0,1}]   ;;  %s859_s1 = inlined_call_operand.vmem [shape: bf16[2,8,32], index: 1, kind: input, shape index: {}, may-alias: {0,1}]   ;;  %s860_s2 = inlined_call_operand.vmem [shape: bf16[32,128], index: 2, kind: input, shape index: {}]   ;;  %s861_s3 = inlined_call_operand.vmem [shape: bf16[32,128], index: 3, kind: input, shape index: {}]   ;;  %s862_s4 = inlined_call_operand.vmem [shape: bf16[32,128], index: 4, kind: input, shape index: {}]   ;;  %s863_s5 = inlined_call_operand.hbm [shape: f32[2,8,128], index: 5, kind: output, shape index: {}]  }
   0x1   :  { %12 = vsyncpa [#allocation3 + $0x1], 0  ;;  %s734_s18 = smov 0   ;;  %s736_s19 = smov 0  }
   0x2   :  { %s738_s20 = smov 0   ;;  %s740_s21 = smov 0  }
   0x3   :  { %s742_s22 = smov 0   ;;  %s744_s23 = smov 0  }
   0x4 LB: > { %s519_s24 = sadd.s32 4294967295, %s702_s23   ;;  %s520_s25 = sadd.s32 4294967294, %s702_s23   ;;  %s702_s23 = sphi %s744_s23, %s18_s23   ;;  %s698_s22 = sphi %s742_s22, %s870_s22   ;;  %s694_s21 = sphi %s740_s21, %s869_s21   ;;  %s690_s20 = sphi %s738_s20, %s868_s20   ;;  %s686_s19 = sphi %s736_s19, %s867_s19   ;;  %s682_s18 = sphi %s734_s18, %s866_s18  }
   0x5   : > { %s30_s26 = sadd.s32 1, %s698_s22  ;;  %s156_s27 = sadd.s32 1, %s690_s20 }
   0x6   : > { %p32_p0 = scmp.ge.s32.totalorder %s30_s26, 2  ;;  %p166_p1 = scmp.ne.s32.totalorder %s690_s20, %s686_s19 }
   0x7   : > { %p167_p2 = scmp.eq.s32.totalorder %s519_s24, 1  ;;  %p172_p3 = scmp.ne.s32.totalorder %s686_s19, %s682_s18 }
   0x8   : > { %s872_s26 = smov (%p32_p0, %s30_s26), 0  ;;  %p173_p5 = scmp.eq.s32.totalorder %s520_s25, 1 }
   0x9   : > { %p774_p4 = por %p167_p2, %p166_p1  ;;  %s151_s29 = ssub.s32 %s698_s22, %s872_s26 }
   0xa   : > { %p523_p6 = scmp.ge.s32.totalorder %s702_s23, 1  ;;  %p154_p7 = scmp.eq.s32.totalorder %s151_s29, 0 }
   0xb   : > { %p781_p8 = por %p173_p5, %p172_p3  ;;  %p217_p9 = scmp.lt.s32.totalorder %s702_s23, 3 }
   0xc   : > { %s787_s6 = scalar_select %p154_p7, %s690_s20, %s156_s27  }
   0xd   : > { %p218_p10 = pnand %p523_p6, %p217_p9 }
   0xe   : > { %p251_p11 = scmp.lt.s32.totalorder (!%p218_p10), %s694_s21, 1  ;;  %s248_s12 = sand.u32 (!%p218_p10), 1, %s686_s19  }
   0xf   : > { %221 = sbr.rel (%p218_p10) target bundleno = 687 (0x2af), region = 40  ;;  %s556_s13 = sshll.u32 (!%p218_p10), %s694_s21, 3 }
  0x10   : > { %s524_s14 = sshll.u32 (!%p218_p10), %s248_s12, 3  ;;  %s431_s17 = scalar_lea.hbm (!%p218_p10), %s863_s5, %s556_s13 }
  0x11   : > { %s250_s24 = scalar_lea.vmem (!%p218_p10), [#allocation2], %s524_s14  ;;  %s435_s27 = sshll.u32 (!%p218_p10), %s431_s17, 4  ;;  %s436_s27 = int_to_ptr.hbm [resolvable:$true] %s435_s27 }
  0x12   : > { %s420_s29 = scalar_lea.sflag (!%p218_p10), [#allocation3], %s248_s12  ;;  %s644_s10 = scalar_lea.hbm (!%p218_p10), %s863_s5, 16 }
  0x14   : > { %v560_v0 = vld [vmem:[%s861_s3 + $0x8] sm:$0xff]  ;;  %v559_v2 = vld [vmem:[%s861_s3] sm:$0xff]  ;;  %s252_s15 = scalar_select %p251_p11, %s694_s21, 1  ;;  %vm280_vm0 = vcmask 261120   ;;  %v376_v15 = vlaneseq  ;;  %vm384_vm2 = vcmask 64512   ;;  %vm401_vm3 = vcmask 1043456  }
  0x15   : > { %v562_v1 = vld [vmem:[%s860_s2 + $0x8] sm:$0xff]  ;;  %290 = vmatpush.bf16.msra.mxu0 %v560_v0  ;;  %v561_v3 = vld [vmem:[%s860_s2] sm:$0xff] }
  0x16   : > { %323 = vmatpush.bf16.msra.mxu1 %v562_v1  ;;  %s525_s16 = sshll.u32 %s252_s15, 2  ;;  %v564_v13 = vld [vmem:[%s862_s4 + $0x8] sm:$0xff]  ;;  %v563_v14 = vld [vmem:[%s862_s4] sm:$0xff]  ;;  %v377_v16 = vshrl.u32 %v376_v15, 7  ;;  %v381_v17 = vand.u32 127, %v376_v15 }
  0x17   : > { %s257_s25 = scalar_lea.vmem %s858_s0, %s525_s16  ;;  %s261_s7 = scalar_lea.vmem %s859_s1, %s525_s16  ;;  %352 = vmatpush.bf16.msra.mxu2 %v564_v13 }
  0x18   : > { %v263_v4 = vld [vmem:[%s257_s25] sm:$0xf]  ;;  %vm382_vm1 = vcmp.le.s32.totalorder %v381_v17, %v377_v16  ;;  %s433_s25 = sshll.u32 %s250_s24, 4  ;;  %s434_s25 = int_to_ptr.vmem [resolvable:$true] %s433_s25 }
  0x19   : > { %291 = vmatpush.bf16.msra.mxu0 %v559_v2  ;;  %v297_v5 = vld [vmem:[%s261_s7] sm:$0xf]  ;;  %s638_s7 = sshra.s32 %s436_s27, 4  ;;  %s639_s7 = int_to_ptr.hbm [resolvable:$true] %s638_s7 }
  0x1a   : > { %324 = vmatpush.bf16.msra.mxu1 %v561_v3  ;;  %s640_s8 = scalar_lea.hbm %s639_s7, 8  ;;  %p645_p1 = scmp.lt.s32.totalorder %s639_s7, %s863_s5 }
  0x1b   : > { %353 = vmatpush.bf16.msra.mxu2 %v563_v14  ;;  %p641_p12 = scmp.ne.s32.totalorder %s639_s7, %s640_s8  ;;  %p646_p2 = scmp.lt.s32.totalorder %s644_s10, %s640_s8 }
  0x1c   : > { %535 = vmatmul.msk.bf16.vlgmr.msra.gmra.mxu0 %vm280_vm0, %v263_v4 }
  0x1d   : > { %544 = vmatmul.msk.bf16.vlgmr.msra.gmra.mxu1 %vm280_vm0, %v297_v5  ;;  %p642_p13 = pnand %p641_p12, %p774_p4  ;;  %p647_p3 = por %p646_p2, %p645_p1 }
  0x1e   : > { %553 = vmatmul.msk.bf16.vlgmr.msra.gmra.mxu2 %vm280_vm0, %v297_v5 }
  0x1f   : > { %p643_p0 = pneg %p642_p13 }
  0x21   : > { %p648_p5 = pnand %p647_p3, %p643_p0 }
  0x99   : > { %v293_v6 = vpop.f32.mrf.mxu0 }
  0x9a   : > { %v326_v7 = vpop.f32.mrf.mxu1  ;;  %v359_v9 = vmul.f32 0.17677669, %v293_v6 }
  0x9b   : > { %v361_v8 = vpack.c.bf16 %v326_v7, %v326_v7 }
  0x9c   : > { %v360_v10 = vpack.c.bf16 %v359_v9, %v359_v9 }
  0x9d   : > { %369 = vmatpush.bf16.xpose.msra.mxu3 %v361_v8 }
  0xa1   : > { %v295_v11 = vpop.f32.mrf.mxu0  ;;  %v355_v22 = vpop.f32.mrf.mxu2 }
  0xa2   : > { %v328_v12 = vpop.f32.mrf.mxu1  ;;  %v397_v23 = vpack.c.bf16 %v355_v22, %v355_v22 }
  0xa4   : > { %370 = vmatmul.bf16.vlgmr.msra.gmra.mxu3 %v360_v10  ;;  %v403_v26 = vsel %vm401_vm3, %v397_v23, 0 }
  0xa5   : > { %412 = vmatpush.bf16.msrb.mxu0 %v403_v26 }
  0xa9   : > { %v357_v28 = vpop.f32.mrf.mxu2 }
 0x127   : > { %v371_v18 = vpop.f32.mrf.mxu3 }
 0x128   : > { %v383_v19 = vsel %vm382_vm1, %v371_v18, -1e+30 }
 0x129   : > { %v385_v20 = vsel %vm384_vm2, %v383_v19, -inf }
 0x12a   : > { %386 = vmax.xlane.f32.xlu0 %v385_v20 }
 0x12f   : > { %v373_v21 = vpop.f32.mrf.mxu3 }
 0x19d   : > { %v387_v24 = vpop.xlane.xlu0 %386 }
 0x19e   : > { %v388_v25 = vsub.f32 %v383_v19, %v387_v24 }
 0x1a0   : > { %v389_v27 = vmul.f32 1.442695, %v388_v25 }
 0x1a2   : > { %620 = vpow2.f32 %v389_v27 }
 0x1a8   : > { %v621_v29 = vpop.eup %620 }
 0x1a9   : > { %v391_v30 = vsel %vm384_vm2, %v621_v29, 0.0 }
 0x1aa   : > { %392 = vadd.xlane.f32.xlu0 %v391_v30 }
 0x21d   : > { %v393_v31 = vpop.xlane.xlu0 %392 }
 0x21e   : > { %622 = vrcp.f32 %v393_v31 }
 0x224   : > { %v623_v32 = vpop.eup %622 }
 0x225   : > { %v395_v33 = vmul.f32 %v623_v32, %v621_v29 }
 0x227   : > { %v396_v34 = vpack.c.bf16 %v395_v33, %v395_v33 }
 0x229   : > { %554 = vmatmul.msk.bf16.vlgmr.msrb.gmra.mxu0 %vm384_vm2, %v396_v34 }
 0x2a6   : > { %v414_v35 = vpop.f32.mrf.mxu0 }
 0x2a7   : > { %418 = vst [vmem:[%s250_s24] sm:$0xff] %v414_v35 }
 0x2a8   : > { %651 = shalt.err (!%p648_p5)
}
 0x2a9   : > { %565 = dma.vmem_to_hbm [thread:$0]  (%p774_p4), %s434_s25, 128, %s436_s27, %s420_s29  }
 0x2ae   : > { %v416_v36 = vpop.f32.mrf.mxu0 }
 0x2af PF: > { %p571_p6 = scmp.ge.s32.totalorder %s702_s23, 2  ;;  %s447_s12 = sand.u32 1, %s682_s18  }
 0x2b0   : > { %s448_s14 = scalar_lea.sflag [#allocation3], %s447_s12 }
 0x2b1   : > { %p568_p7 = pnand %p571_p6, %p781_p8 }
 0x2b3   : > { %p569_p9 = pneg %p568_p7 }
 0x2b5   : > { %677 = dma.done.wait (%p569_p9), %s448_s14, 128  }
 0x2b6   : > { %679 = vsyncadd (%p569_p9), %s448_s14, 4294967168  ;;  %s18_s23 = sadd.s32 1, %s702_s23   ;;  %s866_s18 = smov %s686_s19 }
 0x2b7   : > { %p15_p10 = scmp.ge.s32.totalorder %s18_s23, 4   ;;  %s867_s19 = smov %s690_s20 }
 0x2b8   : > { %s868_s20 = smov %s787_s6  ;;  %s869_s21 = smov %s698_s22 }
 0x2b9   : > { %s870_s22 = smov %s872_s26  ;;  %17 = sbr.rel (!%p15_p10) target bundleno = 4 (0x4), region = 78 }
 0x2be   :  { %454 = vsyncpa [#allocation3], 1 }
 0x2bf   :  { %456 = vsyncpa [#allocation3 + $0x1], 1 }

</bundles_post_ra>
